<compile_context>
chip_gen: v7x
topology: tpu7x:2x2x1
jax: 0.10.0
libtpu: 0.0.40
codegen_flags: <defaults>
</compile_context>

<pallas_src>
import jax
import jax.numpy as jnp
from jax.experimental import pallas as pl
from jax.experimental.pallas import tpu as pltpu

LANES = 128


def _round_up(x, m):
    return (x + m - 1) // m * m


# ----------------------------------------------------------------------------
# Kernel 1: fused conv (im2col matmul) + bias + ReLU + 2x2 max-pool epilogue.
# ----------------------------------------------------------------------------
def _conv_relu_pool_kernel(cols_ref, w_ref, b_ref, o_ref):
    # cols_ref: [OHW, K_pad] bf16, rows ordered (quadrant q major, (ph,pw) minor)
    # w_ref:    [K_pad, 128] bf16   b_ref: [1, 128] f32   o_ref: [OHW//4, 128] f32
    y = jnp.dot(cols_ref[...], w_ref[...], preferred_element_type=jnp.float32)
    y = jnp.maximum(y + b_ref[...], 0.0)
    q = o_ref.shape[0]
    o_ref[...] = jnp.maximum(
        jnp.maximum(y[0 * q:1 * q], y[1 * q:2 * q]),
        jnp.maximum(y[2 * q:3 * q], y[3 * q:4 * q]),
    )


def conv_relu_pool(cols, w_pad, b_pad, *, ohw):
    """cols: [B*ohw, K_pad] bf16; w_pad: [K_pad,128] bf16; b_pad: [1,128] f32."""
    M, k_pad = cols.shape
    B = M // ohw
    q = ohw // 4
    return pl.pallas_call(
        _conv_relu_pool_kernel,
        out_shape=jax.ShapeDtypeStruct((B * q, LANES), jnp.float32),
        grid=(B,),
        in_specs=[
            pl.BlockSpec((ohw, k_pad), lambda b: (b, 0)),
            pl.BlockSpec((k_pad, LANES), lambda b: (0, 0)),   # weights resident
            pl.BlockSpec((1, LANES), lambda b: (0, 0)),
        ],
        out_specs=pl.BlockSpec((q, LANES), lambda b: (b, 0)),
        compiler_params=pltpu.CompilerParams(dimension_semantics=("parallel",)),
    )(cols, w_pad, b_pad)


# ----------------------------------------------------------------------------
# Kernel 2: fused fc1 + ReLU + fc2 + ReLU + fc3.
# ----------------------------------------------------------------------------
def _fc_head_kernel(x_ref, w1_ref, b1_ref, w2_ref, b2_ref, w3_ref, b3_ref, o_ref):
    h = jnp.dot(x_ref[...], w1_ref[...], preferred_element_type=jnp.float32)
    h = jnp.maximum(h + b1_ref[...], 0.0)
    h = jnp.dot(h.astype(w2_ref.dtype), w2_ref[...],
                preferred_element_type=jnp.float32)
    h = jnp.maximum(h + b2_ref[...], 0.0)
    h = jnp.dot(h.astype(w3_ref.dtype), w3_ref[...],
                preferred_element_type=jnp.float32)
    o_ref[...] = h + b3_ref[...]


def fc_head(x, w1, b1, w2, b2, w3, b3, *, tm):
    Mp, K = x.shape
    return pl.pallas_call(
        _fc_head_kernel,
        out_shape=jax.ShapeDtypeStruct((Mp, LANES), jnp.float32),
        grid=(Mp // tm,),
        in_specs=[
            pl.BlockSpec((tm, K), lambda i: (i, 0)),
            pl.BlockSpec((K, LANES), lambda i: (0, 0)),
            pl.BlockSpec((1, LANES), lambda i: (0, 0)),
            pl.BlockSpec((LANES, LANES), lambda i: (0, 0)),
            pl.BlockSpec((1, LANES), lambda i: (0, 0)),
            pl.BlockSpec((LANES, LANES), lambda i: (0, 0)),
            pl.BlockSpec((1, LANES), lambda i: (0, 0)),
        ],
        out_specs=pl.BlockSpec((tm, LANES), lambda i: (i, 0)),
        compiler_params=pltpu.CompilerParams(dimension_semantics=("parallel",)),
    )(x, w1, b1, w2, b2, w3, b3)


# ----------------------------------------------------------------------------
# XLA glue: im2col + pooling-quadrant row reordering (tiny tensors).
# ----------------------------------------------------------------------------
def _im2col_nhwc(x, k):
    """x: [B,H,W,C] -> [B,OH,OW,k*k*C], column order (kh, kw, c)."""
    B, H, W, C = x.shape
    OH, OW = H - k + 1, W - k + 1
    patches = [x[:, i:i + OH, j:j + OW, :] for i in range(k) for j in range(k)]
    p = jnp.stack(patches, axis=3)                 # [B, OH, OW, k*k, C]
    return p.reshape(B, OH, OW, k * k * C)


def _quadrant_reorder(cols):
    """[B,OH,OW,K] -> [B*OH*OW,K], rows sorted by (b, q=(s,t), ph, pw)."""
    B, OH, OW, K = cols.shape
    PH, PW = OH // 2, OW // 2
    c = cols.reshape(B, PH, 2, PW, 2, K)           # (b, ph, s, pw, t, k)
    c = jnp.transpose(c, (0, 2, 4, 1, 3, 5))       # (b, s, t, ph, pw, k)
    return c.reshape(B * OH * OW, K)


# ----------------------------------------------------------------------------
# One-time weight preparation (pad/permute/cast -- params are static).
# ----------------------------------------------------------------------------
def prepare_params(params):
    f32, bf16 = jnp.float32, jnp.bfloat16
    # conv1: torch [6,1,5,5] -> (kh,kw,ic,oc) -> [25,6] -> pad [32,128]
    w1 = jnp.transpose(params["conv1_w"], (2, 3, 1, 0)).reshape(25, 6)
    w1 = jnp.pad(w1, ((0, 32 - 25), (0, LANES - 6))).astype(bf16)
    b1 = jnp.pad(params["conv1_b"], (0, LANES - 6)).reshape(1, LANES).astype(f32)
    # conv2: torch [16,6,5,5] -> [150,16] -> pad [160,128]
    w2 = jnp.transpose(params["conv2_w"], (2, 3, 1, 0)).reshape(150, 16)
    w2 = jnp.pad(w2, ((0, 160 - 150), (0, LANES - 16))).astype(bf16)
    b2 = jnp.pad(params["conv2_b"], (0, LANES - 16)).reshape(1, LANES).astype(f32)
    # fc1: torch [120,256] with NCHW-flatten columns -> permute to NHWC order,
    # transpose to [256,120], pad to [256,128].
    fw1 = params["fc1_w"].reshape(120, 16, 4, 4)               # (j, c, h, w)
    fw1 = jnp.transpose(fw1, (0, 2, 3, 1)).reshape(120, 256)   # cols = h*64+w*16+c
    fw1 = jnp.pad(fw1.T, ((0, 0), (0, LANES - 120))).astype(bf16)
    fb1 = jnp.pad(params["fc1_b"], (0, LANES - 120)).reshape(1, LANES).astype(f32)
    # fc2: [84,120] -> [120,84] -> pad [128,128]
    fw2 = jnp.pad(params["fc2_w"].T, ((0, LANES - 120), (0, LANES - 84))).astype(bf16)
    fb2 = jnp.pad(params["fc2_b"], (0, LANES - 84)).reshape(1, LANES).astype(f32)
    # fc3: [10,84] -> [84,10] -> pad [128,128]
    fw3 = jnp.pad(params["fc3_w"].T, ((0, LANES - 84), (0, LANES - 10))).astype(bf16)
    fb3 = jnp.pad(params["fc3_b"], (0, LANES - 10)).reshape(1, LANES).astype(f32)
    return dict(w1=w1, b1=b1, w2=w2, b2=b2,
                fw1=fw1, fb1=fb1, fw2=fw2, fb2=fb2, fw3=fw3, fb3=fb3)


# ----------------------------------------------------------------------------
# Full forward pass (mirrors the PyTorch Classifier.forward).
# ----------------------------------------------------------------------------
def classifier_forward(x_nchw, p):
    B = x_nchw.shape[0]
    x = jnp.transpose(x_nchw, (0, 2, 3, 1)).astype(jnp.float32)    # [B,28,28,1]

    # Stage 1: conv1(5x5, 1->6) + ReLU + pool(2,2)
    cols = _quadrant_reorder(_im2col_nhwc(x, 5))                   # [B*576, 25]
    cols = jnp.pad(cols, ((0, 0), (0, 32 - 25))).astype(jnp.bfloat16)
    a1 = conv_relu_pool(cols, p["w1"], p["b1"], ohw=576)           # [B*144,128]
    a1 = a1[:, :6].reshape(B, 12, 12, 6)                           # NHWC

    # Stage 2: conv2(5x5, 6->16) + ReLU + pool(2,2)
    cols = _quadrant_reorder(_im2col_nhwc(a1, 5))                  # [B*64, 150]
    cols = jnp.pad(cols, ((0, 0), (0, 160 - 150))).astype(jnp.bfloat16)
    a2 = conv_relu_pool(cols, p["w2"], p["b2"], ohw=64)            # [B*16,128]

    # Flatten in NHWC order (fc1 weights were permuted at init to match the
    # original torch NCHW view(-1, 256) semantics).
    xf = a2.reshape(B, 16, LANES)[:, :, :16].reshape(B, 256)
    tm = min(128, _round_up(B, 16))
    Mp = _round_up(B, tm)
    xf = jnp.pad(xf, ((0, Mp - B), (0, 0))).astype(jnp.bfloat16)

    out = fc_head(xf, p["fw1"], p["fb1"], p["fw2"], p["fb2"],
                  p["fw3"], p["fb3"], tm=tm)                       # [Mp, 128]
    return out[:B, :10]


# ----------------------------------------------------------------------------
# Independent pure-JAX (f32) reference, straight from the torch definition.
# ----------------------------------------------------------------------------
def reference_forward(x_nchw, params):
    x = x_nchw.astype(jnp.float32)
    dn = ("NCHW", "OIHW", "NCHW")
    y = jax.lax.conv_general_dilated(x, params["conv1_w"], (1, 1), "VALID",
                                     dimension_numbers=dn)
    y = jax.nn.relu(y + params["conv1_b"][None, :, None, None])
    y = jax.lax.reduce_window(y, -jnp.inf, jax.lax.max,
                              (1, 1, 2, 2), (1, 1, 2, 2), "VALID")
    y = jax.lax.conv_general_dilated(y, params["conv2_w"], (1, 1), "VALID",
                                     dimension_numbers=dn)
    y = jax.nn.relu(y + params["conv2_b"][None, :, None, None])
    y = jax.lax.reduce_window(y, -jnp.inf, jax.lax.max,
                              (1, 1, 2, 2), (1, 1, 2, 2), "VALID")
    y = y.reshape(y.shape[0], -1)                                  # NCHW flatten
    y = jax.nn.relu(y @ params["fc1_w"].T + params["fc1_b"])
    y = jax.nn.relu(y @ params["fc2_w"].T + params["fc2_b"])
    return y @ params["fc3_w"].T + params["fc3_b"]


def init_params(key):
    """Deterministic synthetic params, torch-layout shapes from __init__."""
    ks = jax.random.split(key, 10)
    n = lambda k, shape, s: s * jax.random.normal(k, shape, jnp.float32)
    return {
        "conv1_w": n(ks[0], (6, 1, 5, 5), 0.10),
        "conv1_b": n(ks[1], (6,), 0.01),
        "conv2_w": n(ks[2], (16, 6, 5, 5), 0.05),
        "conv2_b": n(ks[3], (16,), 0.01),
        "fc1_w":   n(ks[4], (120, 256), 0.05),
        "fc1_b":   n(ks[5], (120,), 0.01),
        "fc2_w":   n(ks[6], (84, 120), 0.05),
        "fc2_b":   n(ks[7], (84,), 0.01),
        "fc3_w":   n(ks[8], (10, 84), 0.05),
        "fc3_b":   n(ks[9], (10,), 0.01),
    }


if __name__ == "__main__":
    key = jax.random.PRNGKey(0)
    k_x, k_p = jax.random.split(key)
    # Input implied by the module: 1 channel, 28x28 (LeNet on MNIST-like data).
    x = jax.random.normal(k_x, (2, 1, 28, 28), dtype=jnp.float32)
    params = init_params(k_p)
    prepped = prepare_params(params)   # one-time weight pad/permute/cast

    fwd = jax.jit(classifier_forward)
    out = jax.block_until_ready(fwd(x, prepped))

    assert out.shape == (2, 10), out.shape
    assert out.dtype == jnp.float32
    assert bool(jnp.all(jnp.isfinite(out)))

    # Loose check vs. an independent f32 reference (kernel runs in bf16 on MXU).
    ref = reference_forward(x, params)
    max_err = float(jnp.max(jnp.abs(out - ref)))
    assert max_err < 0.1, f"max abs error vs reference: {max_err}"

    print("KERNEL_OK")
</pallas_src>

<mosaic_0001>
module attributes {stable_mosaic.version = 11 : i64} {
  func.func @_conv_relu_pool_kernel(%arg0: i32, %arg1: memref<576x32xbf16, #tpu.memory_space<vmem>>, %arg2: memref<32x128xbf16, #tpu.memory_space<vmem>>, %arg3: memref<1x128xf32, #tpu.memory_space<vmem>>, %arg4: memref<144x128xf32, #tpu.memory_space<vmem>>) attributes {dimension_semantics = [#tpu.dimension_semantics<parallel>], iteration_bounds = array<i64: 2>, scalar_prefetch = 0 : i64, scratch_operands = 0 : i64, tpu.core_type = #tpu.core_type<tc>, window_params = [{transform_indices = @transform_0, window_bounds = array<i64: 576, 32>}, {pipeline_mode = #tpu.pipeline_mode<synchronous>, transform_indices = @transform_1, window_bounds = array<i64: 32, 128>}, {pipeline_mode = #tpu.pipeline_mode<synchronous>, transform_indices = @transform_2, window_bounds = array<i64: 1, 128>}, {transform_indices = @transform_3, window_bounds = array<i64: 144, 128>}]} {
    %c0 = arith.constant 0 : index
    %c0_0 = arith.constant 0 : index
    %0 = vector.load %arg1[%c0, %c0_0] : memref<576x32xbf16, #tpu.memory_space<vmem>>, vector<576x32xbf16>
    %c0_1 = arith.constant 0 : index
    %c0_2 = arith.constant 0 : index
    %1 = vector.load %arg2[%c0_1, %c0_2] : memref<32x128xbf16, #tpu.memory_space<vmem>>, vector<32x128xbf16>
    %cst = arith.constant dense<0.000000e+00> : vector<576x128xf32>
    %2 = tpu.matmul %0, %1, %cst {dimension_numbers = #tpu.dot_dimension_numbers<[1], [0], [0], [1], [0, 0, 1, 1], [], []>} : vector<576x32xbf16>, vector<32x128xbf16>, vector<576x128xf32> -> vector<576x128xf32>
    %c0_3 = arith.constant 0 : index
    %c0_4 = arith.constant 0 : index
    %3 = vector.load %arg3[%c0_3, %c0_4] : memref<1x128xf32, #tpu.memory_space<vmem>>, vector<1x128xf32>
    %4 = vector.broadcast %3 : vector<1x128xf32> to vector<576x128xf32>
    %5 = arith.addf %2, %4 : vector<576x128xf32>
    %cst_5 = arith.constant 0.000000e+00 : f32
    %6 = vector.broadcast %cst_5 : f32 to vector<576x128xf32>
    %7 = arith.maximumf %5, %6 : vector<576x128xf32>
    %8 = vector.extract_strided_slice %7 {offsets = [0, 0], sizes = [144, 128], strides = [1, 1]} : vector<576x128xf32> to vector<144x128xf32>
    %9 = vector.extract_strided_slice %7 {offsets = [144, 0], sizes = [144, 128], strides = [1, 1]} : vector<576x128xf32> to vector<144x128xf32>
    %10 = arith.maximumf %8, %9 : vector<144x128xf32>
    %11 = vector.extract_strided_slice %7 {offsets = [288, 0], sizes = [144, 128], strides = [1, 1]} : vector<576x128xf32> to vector<144x128xf32>
    %12 = vector.extract_strided_slice %7 {offsets = [432, 0], sizes = [144, 128], strides = [1, 1]} : vector<576x128xf32> to vector<144x128xf32>
    %13 = arith.maximumf %11, %12 : vector<144x128xf32>
    %14 = arith.maximumf %10, %13 : vector<144x128xf32>
    %c0_6 = arith.constant 0 : index
    %c0_7 = arith.constant 0 : index
    %15 = vector.load %arg4[%c0_6, %c0_7] : memref<144x128xf32, #tpu.memory_space<vmem>>, vector<144x128xf32>
    tpu.vector_store %arg4[%c0_6, %c0_7], %14 {strides = array<i32>} : memref<144x128xf32, #tpu.memory_space<vmem>>, vector<144x128xf32>,
    return
  }
  func.func @transform_0(%arg0: i32) -> (i32, i32) {
    %c0_i32 = arith.constant 0 : i32
    %c0_i32_0 = arith.constant 0 : i32
    return %arg0, %c0_i32 : i32, i32
  }
  func.func @transform_1(%arg0: i32) -> (i32, i32) {
    %c0_i32 = arith.constant 0 : i32
    %c0_i32_0 = arith.constant 0 : i32
    %c0_i32_1 = arith.constant 0 : i32
    return %c0_i32, %c0_i32_0 : i32, i32
  }
  func.func @transform_2(%arg0: i32) -> (i32, i32) {
    %c0_i32 = arith.constant 0 : i32
    %c0_i32_0 = arith.constant 0 : i32
    %c0_i32_1 = arith.constant 0 : i32
    return %c0_i32, %c0_i32_0 : i32, i32
  }
  func.func @transform_3(%arg0: i32) -> (i32, i32) {
    %c0_i32 = arith.constant 0 : i32
    %c0_i32_0 = arith.constant 0 : i32
    return %arg0, %c0_i32 : i32, i32
  }
}

module attributes {stable_mosaic.version = 11 : i64} {
  func.func @_conv_relu_pool_kernel(%arg0: i32, %arg1: memref<64x160xbf16, #tpu.memory_space<vmem>>, %arg2: memref<160x128xbf16, #tpu.memory_space<vmem>>, %arg3: memref<1x128xf32, #tpu.memory_space<vmem>>, %arg4: memref<16x128xf32, #tpu.memory_space<vmem>>) attributes {dimension_semantics = [#tpu.dimension_semantics<parallel>], iteration_bounds = array<i64: 2>, scalar_prefetch = 0 : i64, scratch_operands = 0 : i64, tpu.core_type = #tpu.core_type<tc>, window_params = [{transform_indices = @transform_0, window_bounds = array<i64: 64, 160>}, {pipeline_mode = #tpu.pipeline_mode<synchronous>, transform_indices = @transform_1, window_bounds = array<i64: 160, 128>}, {pipeline_mode = #tpu.pipeline_mode<synchronous>, transform_indices = @transform_2, window_bounds = array<i64: 1, 128>}, {transform_indices = @transform_3, window_bounds = array<i64: 16, 128>}]} {
    %c0 = arith.constant 0 : index
    %c0_0 = arith.constant 0 : index
    %0 = vector.load %arg1[%c0, %c0_0] : memref<64x160xbf16, #tpu.memory_space<vmem>>, vector<64x160xbf16>
    %c0_1 = arith.constant 0 : index
    %c0_2 = arith.constant 0 : index
    %1 = vector.load %arg2[%c0_1, %c0_2] : memref<160x128xbf16, #tpu.memory_space<vmem>>, vector<160x128xbf16>
    %cst = arith.constant dense<0.000000e+00> : vector<64x128xf32>
    %2 = tpu.matmul %0, %1, %cst {dimension_numbers = #tpu.dot_dimension_numbers<[1], [0], [0], [1], [0, 0, 1, 1], [], []>} : vector<64x160xbf16>, vector<160x128xbf16>, vector<64x128xf32> -> vector<64x128xf32>
    %c0_3 = arith.constant 0 : index
    %c0_4 = arith.constant 0 : index
    %3 = vector.load %arg3[%c0_3, %c0_4] : memref<1x128xf32, #tpu.memory_space<vmem>>, vector<1x128xf32>
    %4 = vector.broadcast %3 : vector<1x128xf32> to vector<64x128xf32>
    %5 = arith.addf %2, %4 : vector<64x128xf32>
    %cst_5 = arith.constant 0.000000e+00 : f32
    %6 = vector.broadcast %cst_5 : f32 to vector<64x128xf32>
    %7 = arith.maximumf %5, %6 : vector<64x128xf32>
    %8 = vector.extract_strided_slice %7 {offsets = [0, 0], sizes = [16, 128], strides = [1, 1]} : vector<64x128xf32> to vector<16x128xf32>
    %9 = vector.extract_strided_slice %7 {offsets = [16, 0], sizes = [16, 128], strides = [1, 1]} : vector<64x128xf32> to vector<16x128xf32>
    %10 = arith.maximumf %8, %9 : vector<16x128xf32>
    %11 = vector.extract_strided_slice %7 {offsets = [32, 0], sizes = [16, 128], strides = [1, 1]} : vector<64x128xf32> to vector<16x128xf32>
    %12 = vector.extract_strided_slice %7 {offsets = [48, 0], sizes = [16, 128], strides = [1, 1]} : vector<64x128xf32> to vector<16x128xf32>
    %13 = arith.maximumf %11, %12 : vector<16x128xf32>
    %14 = arith.maximumf %10, %13 : vector<16x128xf32>
    %c0_6 = arith.constant 0 : index
    %c0_7 = arith.constant 0 : index
    %15 = vector.load %arg4[%c0_6, %c0_7] : memref<16x128xf32, #tpu.memory_space<vmem>>, vector<16x128xf32>
    tpu.vector_store %arg4[%c0_6, %c0_7], %14 {strides = array<i32>} : memref<16x128xf32, #tpu.memory_space<vmem>>, vector<16x128xf32>,
    return
  }
  func.func @transform_0(%arg0: i32) -> (i32, i32) {
    %c0_i32 = arith.constant 0 : i32
    %c0_i32_0 = arith.constant 0 : i32
    return %arg0, %c0_i32 : i32, i32
  }
  func.func @transform_1(%arg0: i32) -> (i32, i32) {
    %c0_i32 = arith.constant 0 : i32
    %c0_i32_0 = arith.constant 0 : i32
    %c0_i32_1 = arith.constant 0 : i32
    return %c0_i32, %c0_i32_0 : i32, i32
  }
  func.func @transform_2(%arg0: i32) -> (i32, i32) {
    %c0_i32 = arith.constant 0 : i32
    %c0_i32_0 = arith.constant 0 : i32
    %c0_i32_1 = arith.constant 0 : i32
    return %c0_i32, %c0_i32_0 : i32, i32
  }
  func.func @transform_3(%arg0: i32) -> (i32, i32) {
    %c0_i32 = arith.constant 0 : i32
    %c0_i32_0 = arith.constant 0 : i32
    return %arg0, %c0_i32 : i32, i32
  }
}

module attributes {stable_mosaic.version = 11 : i64} {
  func.func @_fc_head_kernel(%arg0: i32, %arg1: memref<16x256xbf16, #tpu.memory_space<vmem>>, %arg2: memref<256x128xbf16, #tpu.memory_space<vmem>>, %arg3: memref<1x128xf32, #tpu.memory_space<vmem>>, %arg4: memref<128x128xbf16, #tpu.memory_space<vmem>>, %arg5: memref<1x128xf32, #tpu.memory_space<vmem>>, %arg6: memref<128x128xbf16, #tpu.memory_space<vmem>>, %arg7: memref<1x128xf32, #tpu.memory_space<vmem>>, %arg8: memref<16x128xf32, #tpu.memory_space<vmem>>) attributes {dimension_semantics = [#tpu.dimension_semantics<parallel>], iteration_bounds = array<i64: 1>, scalar_prefetch = 0 : i64, scratch_operands = 0 : i64, tpu.core_type = #tpu.core_type<tc>, window_params = [{transform_indices = @transform_0, window_bounds = array<i64: 16, 256>}, {pipeline_mode = #tpu.pipeline_mode<synchronous>, transform_indices = @transform_1, window_bounds = array<i64: 256, 128>}, {pipeline_mode = #tpu.pipeline_mode<synchronous>, transform_indices = @transform_2, window_bounds = array<i64: 1, 128>}, {pipeline_mode = #tpu.pipeline_mode<synchronous>, transform_indices = @transform_3, window_bounds = array<i64: 128, 128>}, {pipeline_mode = #tpu.pipeline_mode<synchronous>, transform_indices = @transform_4, window_bounds = array<i64: 1, 128>}, {pipeline_mode = #tpu.pipeline_mode<synchronous>, transform_indices = @transform_5, window_bounds = array<i64: 128, 128>}, {pipeline_mode = #tpu.pipeline_mode<synchronous>, transform_indices = @transform_6, window_bounds = array<i64: 1, 128>}, {transform_indices = @transform_7, window_bounds = array<i64: 16, 128>}]} {
    %c0 = arith.constant 0 : index
    %c0_0 = arith.constant 0 : index
    %0 = vector.load %arg1[%c0, %c0_0] : memref<16x256xbf16, #tpu.memory_space<vmem>>, vector<16x256xbf16>
    %c0_1 = arith.constant 0 : index
    %c0_2 = arith.constant 0 : index
    %1 = vector.load %arg2[%c0_1, %c0_2] : memref<256x128xbf16, #tpu.memory_space<vmem>>, vector<256x128xbf16>
    %cst = arith.constant dense<0.000000e+00> : vector<16x128xf32>
    %2 = tpu.matmul %0, %1, %cst {dimension_numbers = #tpu.dot_dimension_numbers<[1], [0], [0], [1], [0, 0, 1, 1], [], []>} : vector<16x256xbf16>, vector<256x128xbf16>, vector<16x128xf32> -> vector<16x128xf32>
    %c0_3 = arith.constant 0 : index
    %c0_4 = arith.constant 0 : index
    %3 = vector.load %arg3[%c0_3, %c0_4] : memref<1x128xf32, #tpu.memory_space<vmem>>, vector<1x128xf32>
    %4 = vector.broadcast %3 : vector<1x128xf32> to vector<16x128xf32>
    %5 = arith.addf %2, %4 : vector<16x128xf32>
    %cst_5 = arith.constant 0.000000e+00 : f32
    %6 = vector.broadcast %cst_5 : f32 to vector<16x128xf32>
    %7 = arith.maximumf %5, %6 : vector<16x128xf32>
    %8 = arith.truncf %7 : vector<16x128xf32> to vector<16x128xbf16>
    %c0_6 = arith.constant 0 : index
    %c0_7 = arith.constant 0 : index
    %9 = vector.load %arg4[%c0_6, %c0_7] : memref<128x128xbf16, #tpu.memory_space<vmem>>, vector<128x128xbf16>
    %cst_8 = arith.constant dense<0.000000e+00> : vector<16x128xf32>
    %10 = tpu.matmul %8, %9, %cst_8 {dimension_numbers = #tpu.dot_dimension_numbers<[1], [0], [0], [1], [0, 0, 1, 1], [], []>} : vector<16x128xbf16>, vector<128x128xbf16>, vector<16x128xf32> -> vector<16x128xf32>
    %c0_9 = arith.constant 0 : index
    %c0_10 = arith.constant 0 : index
    %11 = vector.load %arg5[%c0_9, %c0_10] : memref<1x128xf32, #tpu.memory_space<vmem>>, vector<1x128xf32>
    %12 = vector.broadcast %11 : vector<1x128xf32> to vector<16x128xf32>
    %13 = arith.addf %10, %12 : vector<16x128xf32>
    %cst_11 = arith.constant 0.000000e+00 : f32
    %14 = vector.broadcast %cst_11 : f32 to vector<16x128xf32>
    %15 = arith.maximumf %13, %14 : vector<16x128xf32>
    %16 = arith.truncf %15 : vector<16x128xf32> to vector<16x128xbf16>
    %c0_12 = arith.constant 0 : index
    %c0_13 = arith.constant 0 : index
    %17 = vector.load %arg6[%c0_12, %c0_13] : memref<128x128xbf16, #tpu.memory_space<vmem>>, vector<128x128xbf16>
    %cst_14 = arith.constant dense<0.000000e+00> : vector<16x128xf32>
    %18 = tpu.matmul %16, %17, %cst_14 {dimension_numbers = #tpu.dot_dimension_numbers<[1], [0], [0], [1], [0, 0, 1, 1], [], []>} : vector<16x128xbf16>, vector<128x128xbf16>, vector<16x128xf32> -> vector<16x128xf32>
    %c0_15 = arith.constant 0 : index
    %c0_16 = arith.constant 0 : index
    %19 = vector.load %arg7[%c0_15, %c0_16] : memref<1x128xf32, #tpu.memory_space<vmem>>, vector<1x128xf32>
    %20 = vector.broadcast %19 : vector<1x128xf32> to vector<16x128xf32>
    %21 = arith.addf %18, %20 : vector<16x128xf32>
    %c0_17 = arith.constant 0 : index
    %c0_18 = arith.constant 0 : index
    %22 = vector.load %arg8[%c0_17, %c0_18] : memref<16x128xf32, #tpu.memory_space<vmem>>, vector<16x128xf32>
    tpu.vector_store %arg8[%c0_17, %c0_18], %21 {strides = array<i32>} : memref<16x128xf32, #tpu.memory_space<vmem>>, vector<16x128xf32>,
    return
  }
  func.func @transform_0(%arg0: i32) -> (i32, i32) {
    %c0_i32 = arith.constant 0 : i32
    %c0_i32_0 = arith.constant 0 : i32
    return %arg0, %c0_i32 : i32, i32
  }
  func.func @transform_1(%arg0: i32) -> (i32, i32) {
    %c0_i32 = arith.constant 0 : i32
    %c0_i32_0 = arith.constant 0 : i32
    %c0_i32_1 = arith.constant 0 : i32
    return %c0_i32, %c0_i32_0 : i32, i32
  }
  func.func @transform_2(%arg0: i32) -> (i32, i32) {
    %c0_i32 = arith.constant 0 : i32
    %c0_i32_0 = arith.constant 0 : i32
    %c0_i32_1 = arith.constant 0 : i32
    return %c0_i32, %c0_i32_0 : i32, i32
  }
  func.func @transform_3(%arg0: i32) -> (i32, i32) {
    %c0_i32 = arith.constant 0 : i32
    %c0_i32_0 = arith.constant 0 : i32
    %c0_i32_1 = arith.constant 0 : i32
    return %c0_i32, %c0_i32_0 : i32, i32
  }
  func.func @transform_4(%arg0: i32) -> (i32, i32) {
    %c0_i32 = arith.constant 0 : i32
    %c0_i32_0 = arith.constant 0 : i32
    %c0_i32_1 = arith.constant 0 : i32
    return %c0_i32, %c0_i32_0 : i32, i32
  }
  func.func @transform_5(%arg0: i32) -> (i32, i32) {
    %c0_i32 = arith.constant 0 : i32
    %c0_i32_0 = arith.constant 0 : i32
    %c0_i32_1 = arith.constant 0 : i32
    return %c0_i32, %c0_i32_0 : i32, i32
  }
  func.func @transform_6(%arg0: i32) -> (i32, i32) {
    %c0_i32 = arith.constant 0 : i32
    %c0_i32_0 = arith.constant 0 : i32
    %c0_i32_1 = arith.constant 0 : i32
    return %c0_i32, %c0_i32_0 : i32, i32
  }
  func.func @transform_7(%arg0: i32) -> (i32, i32) {
    %c0_i32 = arith.constant 0 : i32
    %c0_i32_0 = arith.constant 0 : i32
    return %arg0, %c0_i32 : i32, i32
  }
}

</mosaic_0001>

<bundles_post_ra>
// kernel: classifier_forward.3
= control target key start
LH: loop header
LB: loop body
LE: loop exit
PB: predicated region body
PF: predicated region fallthrough
CT: control target
= control target key end

     0   :  { %s1356_s12 = smov 0   ;;  %s1752_s0 = inlined_call_operand.vmem [shape: bf16[1152,32], index: 0, kind: input, shape index: {}]   ;;  %s1753_s1 = inlined_call_operand.vmem [shape: bf16[32,128], index: 1, kind: input, shape index: {}]   ;;  %s1754_s2 = inlined_call_operand.vmem [shape: f32[1,128], index: 2, kind: input, shape index: {}]   ;;  %s1755_s3 = inlined_call_operand.vmem [shape: f32[288,128], index: 3, kind: output, shape index: {}]  }
   0x1 LB: > { %s1080_s13 = sadd.s32 4294967295, %s1334_s12   ;;  %p1084_p0 = scmp.ge.s32.totalorder %s1334_s12, 1  ;;  %s1334_s12 = sphi %s1356_s12, %s13_s12  }
   0x2   : > { %p138_p1 = scmp.lt.s32.totalorder %s1334_s12, 3 }
   0x4   : > { %p139_p2 = pnand %p1084_p0, %p138_p1 }
   0x5   : > { %v1290_v0 = vld [vmem:[%s1753_s1] sm:$0xff] (!%p139_p2)   ;;  %s162_s16 = smul.u32 (!%p139_p2), 72, %s1080_s13  ;;  %v1291_v1 = vld [vmem:[%s1753_s1 + $0x8] sm:$0xff] (!%p139_p2)   ;;  %vm450_vm0 = vcmask (!%p139_p2), 261120  }
   0x6   : > { %142 = sbr.rel (%p139_p2) target bundleno = 309 (0x135), region = 32  ;;  %1202 = vmatprep.subr.bf16.mxu0 (!%p139_p2), %v1290_v0  ;;  %1278 = vmatprep.subr.bf16.mxu1 (!%p139_p2), %v1290_v0  ;;  %v1452_v57 = vld [vmem:[%s1754_s2] ss:$0 sm:$0xff] (!%p139_p2) }
   0x7   : > { %p163_p3 = scmp.lt.s32.totalorder (!%p139_p2), %s162_s16, 143  ;;  %1203 = vmatpush3.bf16.msra.mxu0 (!%p139_p2), %v1290_v0  ;;  %1280 = vmatpush3.bf16.msra.mxu1 (!%p139_p2), %v1290_v0  ;;  %s1468_s25 = smul.u32 (!%p139_p2), 18, %s1080_s13 }
   0x8   : > { %1204 = vmatprep.subr.bf16.mxu0 (!%p139_p2), %v1291_v1  ;;  %1279 = vmatprep.subr.bf16.mxu1 (!%p139_p2), %v1291_v1 }
   0x9   : > { %p169_p4 = scmp.lt.s32.totalorder (!%p139_p2), %s1468_s25, 35 }
   0xb   : > { %1205 = vmatpush3.bf16.msra.mxu0 (!%p139_p2), %v1291_v1  ;;  %1281 = vmatpush3.bf16.msra.mxu1 (!%p139_p2), %v1291_v1 }
   0xd   : > { %s1768_s16 = smov (!%p163_p3, %s162_s16), 143  ;;  %s1770_s25 = smov (!%p169_p4, %s1468_s25), 35 }
   0xe   : > { %s1085_s19 = sshll.u32 %s1768_s16, 2  ;;  %s1086_s26 = sshll.u32 %s1770_s25, 3 }
   0xf   : > { %s1375_s22 = scalar_lea.vmem %s1752_s0, %s1085_s19  ;;  %s1596_s29 = scalar_lea.vmem %s1755_s3, %s1086_s26 }
  0x10   : > { %v1292_v2 = vld [vmem:[%s1375_s22] sm:$0xff]   ;;  %v1293_v3 = vld [vmem:[%s1375_s22 + $0x90] sm:$0xff]   ;;  %v1294_v4 = vld [vmem:[%s1375_s22 + $0x8] sm:$0xff]  }
  0x11   : > { %1206 = vmatprep.mubr.msk.bf16.mxu0 %vm450_vm0, %v1292_v2  ;;  %1242 = vmatprep.mubr.msk.bf16.mxu1 %vm450_vm0, %v1293_v3  ;;  %v1295_v5 = vld [vmem:[%s1375_s22 + $0x98] sm:$0xff]   ;;  %v1296_v6 = vld [vmem:[%s1375_s22 + $0x10] sm:$0xff]   ;;  %v1297_v7 = vld [vmem:[%s1375_s22 + $0xa0] sm:$0xff]  }
  0x12   : > { %1207 = vmatmul.mubr.msk.bf16.vlgmr.msra.gmra.mrb[0].mxu0 %vm450_vm0, %v1294_v4  ;;  %1243 = vmatmul.mubr.msk.bf16.vlgmr.msra.gmra.mrb[0].mxu1 %vm450_vm0, %v1295_v5  ;;  %v1298_v8 = vld [vmem:[%s1375_s22 + $0x18] sm:$0xff]   ;;  %v1299_v9 = vld [vmem:[%s1375_s22 + $0xa8] sm:$0xff]   ;;  %v1300_v10 = vld [vmem:[%s1375_s22 + $0x20] sm:$0xff]  }
  0x13   : > { %1210 = vmatprep.mubr.msk.bf16.mxu0 %vm450_vm0, %v1296_v6  ;;  %1246 = vmatprep.mubr.msk.bf16.mxu1 %vm450_vm0, %v1297_v7  ;;  %v1301_v11 = vld [vmem:[%s1375_s22 + $0xb0] sm:$0xff]   ;;  %v1302_v12 = vld [vmem:[%s1375_s22 + $0x28] sm:$0xff]   ;;  %v1303_v13 = vld [vmem:[%s1375_s22 + $0xb8] sm:$0xff]  }
  0x14   : > { %v1304_v14 = vld [vmem:[%s1375_s22 + $0x30] sm:$0xff]   ;;  %v1305_v15 = vld [vmem:[%s1375_s22 + $0xc0] sm:$0xff]   ;;  %v1306_v16 = vld [vmem:[%s1375_s22 + $0x38] sm:$0xff]  }
  0x15   : > { %v1307_v17 = vld [vmem:[%s1375_s22 + $0xc8] sm:$0xff]   ;;  %v1308_v18 = vld [vmem:[%s1375_s22 + $0x40] sm:$0xff]   ;;  %v1309_v19 = vld [vmem:[%s1375_s22 + $0xd0] sm:$0xff]  }
  0x16   : > { %v1310_v20 = vld [vmem:[%s1375_s22 + $0x48] sm:$0xff]   ;;  %v1311_v21 = vld [vmem:[%s1375_s22 + $0xd8] sm:$0xff]   ;;  %v1312_v22 = vld [vmem:[%s1375_s22 + $0x50] sm:$0xff]  }
  0x17   : > { %v1313_v23 = vld [vmem:[%s1375_s22 + $0xe0] sm:$0xff]   ;;  %v1314_v24 = vld [vmem:[%s1375_s22 + $0x58] sm:$0xff]   ;;  %v1315_v25 = vld [vmem:[%s1375_s22 + $0xe8] sm:$0xff]  }
  0x18   : > { %v1316_v26 = vld [vmem:[%s1375_s22 + $0x60] sm:$0xff]   ;;  %v1317_v27 = vld [vmem:[%s1375_s22 + $0xf0] sm:$0xff]   ;;  %v1318_v28 = vld [vmem:[%s1375_s22 + $0x68] sm:$0xff]  }
  0x19   : > { %v1319_v29 = vld [vmem:[%s1375_s22 + $0xf8] sm:$0xff]   ;;  %v1320_v30 = vld [vmem:[%s1375_s22 + $0x70] sm:$0xff]   ;;  %v1321_v31 = vld [vmem:[%s1375_s22 + $0x100] sm:$0xff]  }
  0x1a   : > { %1211 = vmatmul.mubr.msk.bf16.gmra.mrb[4].mxu0 %vm450_vm0, %v1298_v8  ;;  %1247 = vmatmul.mubr.msk.bf16.gmra.mrb[4].mxu1 %vm450_vm0, %v1299_v9  ;;  %v1322_v32 = vld [vmem:[%s1375_s22 + $0x78] sm:$0xff]   ;;  %v1323_v33 = vld [vmem:[%s1375_s22 + $0x108] sm:$0xff]   ;;  %v1324_v34 = vld [vmem:[%s1375_s22 + $0x80] sm:$0xff]  }
  0x1b   : > { %1214 = vmatprep.mubr.msk.bf16.mxu0 %vm450_vm0, %v1300_v10  ;;  %1250 = vmatprep.mubr.msk.bf16.mxu1 %vm450_vm0, %v1301_v11  ;;  %v1325_v35 = vld [vmem:[%s1375_s22 + $0x110] sm:$0xff]   ;;  %v1326_v36 = vld [vmem:[%s1375_s22 + $0x88] sm:$0xff]   ;;  %v1327_v37 = vld [vmem:[%s1375_s22 + $0x118] sm:$0xff]  }
  0x22   : > { %1215 = vmatmul.mubr.msk.bf16.gmra.mrb[8].mxu0 %vm450_vm0, %v1302_v12  ;;  %1251 = vmatmul.mubr.msk.bf16.gmra.mrb[8].mxu1 %vm450_vm0, %v1303_v13 }
  0x23   : > { %1218 = vmatprep.mubr.msk.bf16.mxu0 %vm450_vm0, %v1304_v14  ;;  %1254 = vmatprep.mubr.msk.bf16.mxu1 %vm450_vm0, %v1305_v15 }
  0x2a   : > { %1219 = vmatmul.mubr.msk.bf16.gmra.mrb[12].mxu0 %vm450_vm0, %v1306_v16  ;;  %1255 = vmatmul.mubr.msk.bf16.gmra.mrb[12].mxu1 %vm450_vm0, %v1307_v17 }
  0x2b   : > { %1222 = vmatprep.mubr.msk.bf16.mxu0 %vm450_vm0, %v1308_v18  ;;  %1258 = vmatprep.mubr.msk.bf16.mxu1 %vm450_vm0, %v1309_v19 }
  0x32   : > { %1223 = vmatmul.mubr.msk.bf16.gmra.mrb[16].mxu0 %vm450_vm0, %v1310_v20  ;;  %1259 = vmatmul.mubr.msk.bf16.gmra.mrb[16].mxu1 %vm450_vm0, %v1311_v21 }
  0x33   : > { %1226 = vmatprep.mubr.msk.bf16.mxu0 %vm450_vm0, %v1312_v22  ;;  %1262 = vmatprep.mubr.msk.bf16.mxu1 %vm450_vm0, %v1313_v23 }
  0x3a   : > { %1227 = vmatmul.mubr.msk.bf16.gmra.mrb[20].mxu0 %vm450_vm0, %v1314_v24  ;;  %1263 = vmatmul.mubr.msk.bf16.gmra.mrb[20].mxu1 %vm450_vm0, %v1315_v25 }
  0x3b   : > { %1230 = vmatprep.mubr.msk.bf16.mxu0 %vm450_vm0, %v1316_v26  ;;  %1266 = vmatprep.mubr.msk.bf16.mxu1 %vm450_vm0, %v1317_v27 }
  0x42   : > { %1231 = vmatmul.mubr.msk.bf16.gmra.mrb[24].mxu0 %vm450_vm0, %v1318_v28  ;;  %1267 = vmatmul.mubr.msk.bf16.gmra.mrb[24].mxu1 %vm450_vm0, %v1319_v29 }
  0x43   : > { %1234 = vmatprep.mubr.msk.bf16.mxu0 %vm450_vm0, %v1320_v30  ;;  %1270 = vmatprep.mubr.msk.bf16.mxu1 %vm450_vm0, %v1321_v31 }
  0x4a   : > { %1235 = vmatmul.mubr.msk.bf16.gmra.mrb[28].mxu0 %vm450_vm0, %v1322_v32  ;;  %1271 = vmatmul.mubr.msk.bf16.gmra.mrb[28].mxu1 %vm450_vm0, %v1323_v33 }
  0x4b   : > { %1238 = vmatprep.mubr.msk.bf16.mxu0 %vm450_vm0, %v1324_v34  ;;  %1274 = vmatprep.mubr.msk.bf16.mxu1 %vm450_vm0, %v1325_v35 }
  0x52   : > { %1239 = vmatmul.mubr.msk.bf16.gmra.mrb[32].mxu0 %vm450_vm0, %v1326_v36  ;;  %1275 = vmatmul.mubr.msk.bf16.gmra.mrb[32].mxu1 %vm450_vm0, %v1327_v37 }
  0xe5   : > { %v1208_v38 = vpop.f32.mrb[0].mxu0  ;;  %v1244_v39 = vpop.f32.mrb[0].mxu1 }
  0xe6   : > { %v593_v40 = vpop.f32.mrb[1].mxu0  ;;  %v737_v41 = vpop.f32.mrb[1].mxu1  ;;  %v1455_v63 = vadd.f32 %v1208_v38, %v1452_v57  ;;  %v1458_v0 = vadd.f32 %v1244_v39, %v1452_v57 }
  0xe7   : > { %v1209_v42 = vpop.f32.mrb[2].mxu0  ;;  %v1245_v43 = vpop.f32.mrb[2].mxu1  ;;  %v1461_v1 = vadd.f32 %v1452_v57, %v593_v40  ;;  %v1464_v2 = vadd.f32 %v1452_v57, %v737_v41 }
  0xe8   : > { %v596_v44 = vpop.f32.mrb[3].mxu0  ;;  %v740_v45 = vpop.f32.mrb[3].mxu1  ;;  %v882_v4 = vmax.f32 %v1455_v63, 0.0  ;;  %v1472_v5 = vadd.f32 %v1209_v42, %v1452_v57  ;;  %v1475_v6 = vadd.f32 %v1245_v43, %v1452_v57  ;;  %v918_v9 = vmax.f32 %v1458_v0, 0.0 }
  0xe9   : > { %v1479_v10 = vadd.f32 %v1452_v57, %v596_v44  ;;  %v1482_v11 = vadd.f32 %v1452_v57, %v740_v45  ;;  %v880_v21 = vmax.f32 %v1461_v1, 0.0  ;;  %v916_v22 = vmax.f32 %v1464_v2, 0.0 }
  0xea   : > { %v883_v26 = vmax.f32 %v1472_v5, 0.0  ;;  %v919_v27 = vmax.f32 %v1475_v6, 0.0 }
  0xeb   : > { %v881_v30 = vmax.f32 %v1479_v10, 0.0  ;;  %v917_v31 = vmax.f32 %v1482_v11, 0.0 }
  0xed   : > { %v1212_v46 = vpop.f32.mrb[4].mxu0  ;;  %v1248_v47 = vpop.f32.mrb[4].mxu1 }
  0xee   : > { %v609_v48 = vpop.f32.mrb[5].mxu0  ;;  %v753_v49 = vpop.f32.mrb[5].mxu1  ;;  %v1485_v12 = vadd.f32 %v1212_v46, %v1452_v57  ;;  %v1492_v15 = vadd.f32 %v1248_v47, %v1452_v57 }
  0xef   : > { %v1213_v50 = vpop.f32.mrb[6].mxu0  ;;  %v1249_v51 = vpop.f32.mrb[6].mxu1  ;;  %v1495_v16 = vadd.f32 %v1452_v57, %v609_v48  ;;  %v1498_v17 = vadd.f32 %v1452_v57, %v753_v49 }
  0xf0   : > { %v612_v52 = vpop.f32.mrb[7].mxu0  ;;  %v756_v53 = vpop.f32.mrb[7].mxu1  ;;  %v1501_v18 = vadd.f32 %v1213_v50, %v1452_v57  ;;  %v1510_v23 = vadd.f32 %v1249_v51, %v1452_v57  ;;  %v886_v32 = vmax.f32 %v1485_v12, 0.0  ;;  %v922_v34 = vmax.f32 %v1492_v15, 0.0 }
  0xf1   : > { %v1513_v24 = vadd.f32 %v1452_v57, %v612_v52  ;;  %v1521_v28 = vadd.f32 %v1452_v57, %v756_v53  ;;  %v884_v35 = vmax.f32 %v1495_v16, 0.0  ;;  %v920_v36 = vmax.f32 %v1498_v17, 0.0 }
  0xf3   : > { %v885_v39 = vmax.f32 %v1513_v24, 0.0  ;;  %v921_v43 = vmax.f32 %v1521_v28, 0.0 }
  0xf5   : > { %v1216_v54 = vpop.f32.mrb[8].mxu0  ;;  %v1252_v55 = vpop.f32.mrb[8].mxu1 }
  0xf6   : > { %v625_v56 = vpop.f32.mrb[9].mxu0  ;;  %v769_v58 = vpop.f32.mrb[9].mxu1  ;;  %v1524_v29 = vadd.f32 %v1216_v54, %v1452_v57  ;;  %v1530_v33 = vadd.f32 %v1252_v55, %v1452_v57 }
  0xf7   : > { %v1217_v59 = vpop.f32.mrb[10].mxu0  ;;  %v1253_v60 = vpop.f32.mrb[10].mxu1  ;;  %v1539_v40 = vadd.f32 %v1452_v57, %v625_v56  ;;  %v1542_v41 = vadd.f32 %v1452_v57, %v769_v58 }
  0xf8   : > { %v628_v61 = vpop.f32.mrb[11].mxu0  ;;  %v772_v62 = vpop.f32.mrb[11].mxu1  ;;  %v1552_v45 = vadd.f32 %v1217_v59, %v1452_v57  ;;  %v1559_v50 = vadd.f32 %v1253_v60, %v1452_v57 }
  0xf9   : > { %v1562_v51 = vadd.f32 %v1452_v57, %v628_v61  ;;  %v1568_v55 = vadd.f32 %v1452_v57, %v772_v62  ;;  %v888_v61 = vmax.f32 %v1539_v40, 0.0  ;;  %v924_v2 = vmax.f32 %v1542_v41, 0.0 }
  0xfd   : > { %v1220_v3 = vpop.f32.mrb[12].mxu0  ;;  %v1256_v7 = vpop.f32.mrb[12].mxu1 }
  0xfe   : > { %v641_v8 = vpop.f32.mrb[13].mxu0  ;;  %v1487_v13 = vpop.f32.mrb[13].mxu1  ;;  %v1571_v56 = vadd.f32 %v1220_v3, %v1452_v57  ;;  %v1583_v62 = vadd.f32 %v1256_v7, %v1452_v57 }
  0xff   : > { %v1489_v14 = vpop.f32.mrb[14].mxu0  ;;  %v1503_v19 = vpop.f32.mrb[14].mxu1  ;;  %v1586_v3 = vadd.f32 %v1452_v57, %v641_v8  ;;  %v1600_v8 = vadd.f32 %v1452_v57, %v1487_v13 }
 0x100   : > { %v1505_v20 = vpop.f32.mrb[15].mxu0  ;;  %v1515_v25 = vpop.f32.mrb[15].mxu1  ;;  %v1610_v37 = vadd.f32 %v1503_v19, %v1452_v57 }
 0x101   : > { %v1622_v19 = vadd.f32 %v1452_v57, %v1515_v25 }
 0x105   : > { %v1224_v42 = vpop.f32.mrb[16].mxu0  ;;  %v1260_v47 = vpop.f32.mrb[16].mxu1 }
 0x106   : > { %v666_v46 = vadd.f32 %v1224_v42, %v1452_v57  ;;  %v1555_v48 = vpop.f32.mrb[17].mxu0  ;;  %v810_v52 = vadd.f32 %v1260_v47, %v1452_v57  ;;  %v1565_v53 = vpop.f32.mrb[17].mxu1 }
 0x107   : > { %v1225_v54 = vpop.f32.mrb[18].mxu0  ;;  %v1261_v1 = vpop.f32.mrb[18].mxu1  ;;  %v1678_v41 = vadd.f32 %v1452_v57, %v1565_v53 }
 0x108   : > { %v898_v58 = vmax.f32 %v666_v46, 0.0  ;;  %v669_v59 = vadd.f32 %v1225_v54, %v1452_v57  ;;  %v1574_v60 = vpop.f32.mrb[19].mxu0  ;;  %v934_v10 = vmax.f32 %v810_v52, 0.0  ;;  %v813_v11 = vadd.f32 %v1261_v1, %v1452_v57  ;;  %v1580_v42 = vpop.f32.mrb[19].mxu1 }
 0x109   : > { %v1686_v15 = vadd.f32 %v1452_v57, %v1574_v60 }
 0x10a   : > { %v952_v46 = vmax.f32 %v880_v21, %v898_v58  ;;  %v899_v47 = vmax.f32 %v669_v59, 0.0  ;;  %v970_v44 = vmax.f32 %v916_v22, %v934_v10  ;;  %v935_v38 = vmax.f32 %v813_v11, 0.0 }
 0x10b   : > { %v1604_v21 = vadd.f32 %v1489_v14, %v1452_v57  ;;  %v1615_v14 = vadd.f32 %v1452_v57, %v1505_v20 }
 0x10c   : > { %v953_v7 = vmax.f32 %v881_v30, %v899_v47  ;;  %v988_v22 = vmax.f32 %v952_v46, %v970_v44  ;;  %v971_v58 = vmax.f32 %v917_v31, %v935_v38 }
 0x10d   : > { %v1228_v59 = vpop.f32.mrb[20].mxu0  ;;  %v1264_v13 = vpop.f32.mrb[20].mxu1 }
 0x10e   : > { %v682_v30 = vadd.f32 %v1228_v59, %v1452_v57  ;;  %v673_v47 = vpop.f32.mrb[21].mxu0  ;;  %1006 = vst [vmem:[%s1596_s29] sm:$0xff] %v988_v22  ;;  %v989_v31 = vmax.f32 %v953_v7, %v971_v58  ;;  %v826_v38 = vadd.f32 %v1264_v13, %v1452_v57  ;;  %v817_v46 = vpop.f32.mrb[21].mxu1 }
 0x10f   : > { %v674_v44 = vadd.f32 %v1452_v57, %v673_v47  ;;  %v1229_v10 = vpop.f32.mrb[22].mxu0  ;;  %v818_v49 = vadd.f32 %v1452_v57, %v817_v46  ;;  %v1265_v11 = vpop.f32.mrb[22].mxu1 }
 0x110   : > { %v902_v59 = vmax.f32 %v682_v30, 0.0  ;;  %v685_v54 = vadd.f32 %v1229_v10, %v1452_v57  ;;  %v676_v20 = vpop.f32.mrb[23].mxu0  ;;  %1007 = vst [vmem:[%s1596_s29 + $0x8] sm:$0xff] %v989_v31  ;;  %v938_v22 = vmax.f32 %v826_v38, 0.0  ;;  %v829_v58 = vadd.f32 %v1265_v11, %v1452_v57  ;;  %v820_v47 = vpop.f32.mrb[23].mxu1 }
 0x111   : > { %v900_v7 = vmax.f32 %v674_v44, 0.0  ;;  %v677_v13 = vadd.f32 %v1452_v57, %v676_v20  ;;  %v936_v25 = vmax.f32 %v818_v49, 0.0  ;;  %v821_v30 = vadd.f32 %v1452_v57, %v820_v47 }
 0x112   : > { %v956_v1 = vmax.f32 %v884_v35, %v902_v59  ;;  %v903_v52 = vmax.f32 %v685_v54, 0.0  ;;  %v974_v10 = vmax.f32 %v920_v36, %v938_v22  ;;  %v939_v38 = vmax.f32 %v829_v58, 0.0 }
 0x113   : > { %v954_v31 = vmax.f32 %v882_v4, %v900_v7  ;;  %v901_v44 = vmax.f32 %v677_v13, 0.0  ;;  %v928_v11 = vmax.f32 %v1600_v8, 0.0  ;;  %v972_v46 = vmax.f32 %v918_v9, %v936_v25 }
 0x114   : > { %v957_v16 = vmax.f32 %v885_v39, %v903_v52  ;;  %v937_v35 = vmax.f32 %v821_v30, 0.0  ;;  %v895_v49 = vmax.f32 %v1604_v21, 0.0  ;;  %v992_v54 = vmax.f32 %v956_v1, %v974_v10 }
 0x115   : > { %v975_v17 = vmax.f32 %v921_v43, %v939_v38  ;;  %v955_v63 = vmax.f32 %v883_v26, %v901_v44  ;;  %v1232_v4 = vpop.f32.mrb[24].mxu0  ;;  %v893_v36 = vmax.f32 %v1615_v14, 0.0  ;;  %v990_v0 = vmax.f32 %v954_v31, %v972_v46  ;;  %v1268_v39 = vpop.f32.mrb[24].mxu1 }
 0x116   : > { %v973_v9 = vmax.f32 %v919_v27, %v937_v35  ;;  %v698_v24 = vadd.f32 %v1232_v4, %v1452_v57  ;;  %v689_v52 = vpop.f32.mrb[25].mxu0  ;;  %v929_v1 = vmax.f32 %v1622_v19, 0.0  ;;  %1010 = vst [vmem:[%s1596_s29 + $0x20] sm:$0xff] %v992_v54  ;;  %v842_v5 = vadd.f32 %v1268_v39, %v1452_v57  ;;  %v833_v43 = vpop.f32.mrb[25].mxu1 }
 0x117   : > { %v993_v28 = vmax.f32 %v957_v16, %v975_v17  ;;  %v690_v26 = vadd.f32 %v1452_v57, %v689_v52  ;;  %v1233_v59 = vpop.f32.mrb[26].mxu0  ;;  %1008 = vst [vmem:[%s1596_s29 + $0x10] sm:$0xff] %v990_v0  ;;  %v834_v27 = vadd.f32 %v1452_v57, %v833_v43  ;;  %v1269_v7 = vpop.f32.mrb[26].mxu1 }
 0x118   : > { %v991_v20 = vmax.f32 %v955_v63, %v973_v9  ;;  %v906_v6 = vmax.f32 %v698_v24, 0.0  ;;  %v701_v22 = vadd.f32 %v1233_v59, %v1452_v57  ;;  %v692_v58 = vpop.f32.mrb[27].mxu0  ;;  %v942_v13 = vmax.f32 %v842_v5, 0.0  ;;  %v836_v10 = vpop.f32.mrb[27].mxu1 }
 0x119   : > { %1011 = vst [vmem:[%s1596_s29 + $0x28] sm:$0xff] %v993_v28  ;;  %v904_v47 = vmax.f32 %v690_v26, 0.0  ;;  %v845_v25 = vadd.f32 %v1269_v7, %v1452_v57  ;;  %v693_v30 = vadd.f32 %v1452_v57, %v692_v58  ;;  %v940_v38 = vmax.f32 %v834_v27, 0.0 }
 0x11a   : > { %1009 = vst [vmem:[%s1596_s29 + $0x18] sm:$0xff] %v991_v20  ;;  %v960_v31 = vmax.f32 %v888_v61, %v906_v6  ;;  %v907_v44 = vmax.f32 %v701_v22, 0.0  ;;  %v837_v46 = vadd.f32 %v1452_v57, %v836_v10  ;;  %v978_v16 = vmax.f32 %v924_v2, %v942_v13 }
 0x11b   : > { %v958_v35 = vmax.f32 %v886_v32, %v904_v47  ;;  %v943_v54 = vmax.f32 %v845_v25, 0.0  ;;  %v905_v17 = vmax.f32 %v693_v30, 0.0  ;;  %v1670_v63 = vadd.f32 %v1452_v57, %v1555_v48 }
 0x11c   : > { %v976_v40 = vmax.f32 %v922_v34, %v940_v38  ;;  %v1756_v61 = vmax.f32 %v1562_v51, 0.0  ;;  %v941_v0 = vmax.f32 %v837_v46, 0.0  ;;  %v996_v12 = vmax.f32 %v960_v31, %v978_v16 }
 0x11d   : > { %v1757_v32 = vmax.f32 %v1568_v55, 0.0  ;;  %v1758_v9 = vmax.f32 %v1501_v18, 0.0  ;;  %v1236_v24 = vpop.f32.mrb[28].mxu0  ;;  %v1759_v51 = vmax.f32 %v1510_v23, 0.0  ;;  %v1272_v52 = vpop.f32.mrb[28].mxu1  ;;  %v1693_v55 = vadd.f32 %v1452_v57, %v1580_v42 }
 0x11e   : > { %v961_v4 = vmax.f32 %v1756_v61, %v907_v44  ;;  %v994_v34 = vmax.f32 %v958_v35, %v976_v40  ;;  %v714_v53 = vadd.f32 %v1236_v24, %v1452_v57  ;;  %v705_v28 = vpop.f32.mrb[29].mxu0  ;;  %1014 = vst [vmem:[%s1596_s29 + $0x40] sm:$0xff] %v996_v12  ;;  %v858_v5 = vadd.f32 %v1272_v52, %v1452_v57  ;;  %v849_v26 = vpop.f32.mrb[29].mxu1 }
 0x11f   : > { %v979_v2 = vmax.f32 %v1757_v32, %v943_v54  ;;  %v959_v48 = vmax.f32 %v1758_v9, %v905_v17  ;;  %v977_v39 = vmax.f32 %v1759_v51, %v941_v0  ;;  %v706_v60 = vadd.f32 %v1452_v57, %v705_v28  ;;  %v1237_v43 = vpop.f32.mrb[30].mxu0  ;;  %v1273_v27 = vpop.f32.mrb[30].mxu1 }
 0x120   : > { %1012 = vst [vmem:[%s1596_s29 + $0x30] sm:$0xff] %v994_v34  ;;  %v910_v59 = vmax.f32 %v714_v53, 0.0  ;;  %v850_v20 = vadd.f32 %v1452_v57, %v849_v26  ;;  %v717_v6 = vadd.f32 %v1237_v43, %v1452_v57  ;;  %v708_v22 = vpop.f32.mrb[31].mxu0  ;;  %v946_v42 = vmax.f32 %v858_v5, 0.0  ;;  %v852_v47 = vpop.f32.mrb[31].mxu1 }
 0x121   : > { %v997_v18 = vmax.f32 %v961_v4, %v979_v2  ;;  %v995_v23 = vmax.f32 %v959_v48, %v977_v39  ;;  %v908_v7 = vmax.f32 %v706_v60, 0.0  ;;  %v861_v58 = vadd.f32 %v1273_v27, %v1452_v57 }
 0x122   : > { %v709_v13 = vadd.f32 %v1452_v57, %v708_v22  ;;  %v1760_v25 = vmax.f32 %v1586_v3, 0.0  ;;  %v944_v10 = vmax.f32 %v850_v20, 0.0  ;;  %v911_v31 = vmax.f32 %v717_v6, 0.0 }
 0x123   : > { %1015 = vst [vmem:[%s1596_s29 + $0x48] sm:$0xff] %v997_v18  ;;  %1013 = vst [vmem:[%s1596_s29 + $0x38] sm:$0xff] %v995_v23  ;;  %v853_v38 = vadd.f32 %v1452_v57, %v852_v47  ;;  %v982_v44 = vmax.f32 %v928_v11, %v946_v42  ;;  %v1761_v46 = vmax.f32 %v1524_v29, 0.0  ;;  %v947_v35 = vmax.f32 %v861_v58, 0.0 }
 0x124   : > { %v964_v30 = vmax.f32 %v1760_v25, %v910_v59  ;;  %v909_v54 = vmax.f32 %v709_v13, 0.0  ;;  %v896_v17 = vmax.f32 %v1670_v63, 0.0  ;;  %v1762_v40 = vmax.f32 %v1530_v33, 0.0 }
 0x125   : > { %v962_v16 = vmax.f32 %v1761_v46, %v908_v7  ;;  %v965_v3 = vmax.f32 %v893_v36, %v911_v31  ;;  %v945_v4 = vmax.f32 %v853_v38, 0.0  ;;  %v932_v0 = vmax.f32 %v1678_v41, 0.0  ;;  %v1240_v32 = vpop.f32.mrb[32].mxu0  ;;  %v1276_v36 = vpop.f32.mrb[32].mxu1 }
 0x126   : > { %v980_v61 = vmax.f32 %v1762_v40, %v944_v10  ;;  %v1000_v12 = vmax.f32 %v964_v30, %v982_v44  ;;  %v983_v8 = vmax.f32 %v929_v1, %v947_v35  ;;  %v1763_v29 = vmax.f32 %v1552_v45, 0.0  ;;  %v721_v41 = vpop.f32.mrb[33].mxu0  ;;  %v865_v24 = vpop.f32.mrb[33].mxu1 }
 0x127   : > { %v897_v63 = vmax.f32 %v1686_v15, 0.0  ;;  %v1764_v2 = vmax.f32 %v1559_v50, 0.0  ;;  %v730_v14 = vadd.f32 %v1240_v32, %v1452_v57  ;;  %v933_v48 = vmax.f32 %v1693_v55, 0.0  ;;  %v1241_v15 = vpop.f32.mrb[34].mxu0  ;;  %v1277_v53 = vpop.f32.mrb[34].mxu1 }
 0x128   : > { %v963_v11 = vmax.f32 %v1763_v29, %v909_v54  ;;  %v998_v33 = vmax.f32 %v962_v16, %v980_v61  ;;  %1018 = vst [vmem:[%s1596_s29 + $0x60] sm:$0xff] %v1000_v12  ;;  %v1001_v19 = vmax.f32 %v965_v3, %v983_v8  ;;  %v874_v45 = vadd.f32 %v1276_v36, %v1452_v57  ;;  %v724_v52 = vpop.f32.mrb[35].mxu0  ;;  %v868_v60 = vpop.f32.mrb[35].mxu1 }
 0x129   : > { %v981_v9 = vmax.f32 %v1764_v2, %v945_v4  ;;  %v722_v1 = vadd.f32 %v1452_v57, %v721_v41  ;;  %v914_v50 = vmax.f32 %v730_v14, 0.0  ;;  %v866_v51 = vadd.f32 %v1452_v57, %v865_v24 }
 0x12a   : > { %1016 = vst [vmem:[%s1596_s29 + $0x50] sm:$0xff] %v998_v33  ;;  %v733_v39 = vadd.f32 %v1241_v15, %v1452_v57  ;;  %1019 = vst [vmem:[%s1596_s29 + $0x68] sm:$0xff] %v1001_v19  ;;  %v950_v28 = vmax.f32 %v874_v45, 0.0  ;;  %v877_v18 = vadd.f32 %v1277_v53, %v1452_v57  ;;  %v725_v5 = vadd.f32 %v1452_v57, %v724_v52 }
 0x12b   : > { %v999_v34 = vmax.f32 %v963_v11, %v981_v9  ;;  %v912_v55 = vmax.f32 %v722_v1, 0.0  ;;  %v968_v26 = vmax.f32 %v896_v17, %v914_v50  ;;  %v948_v43 = vmax.f32 %v866_v51, 0.0 }
 0x12c   : > { %v915_v23 = vmax.f32 %v733_v39, 0.0  ;;  %v869_v59 = vadd.f32 %v1452_v57, %v868_v60  ;;  %v986_v20 = vmax.f32 %v932_v0, %v950_v28  ;;  %v1765_v6 = vmax.f32 %v1571_v56, 0.0 }
 0x12d   : > { %1017 = vst [vmem:[%s1596_s29 + $0x58] sm:$0xff] %v999_v34  ;;  %v951_v22 = vmax.f32 %v877_v18, 0.0  ;;  %v913_v42 = vmax.f32 %v725_v5, 0.0  ;;  %v931_v7 = vmax.f32 %v1610_v37, 0.0  ;;  %v1766_v58 = vmax.f32 %v1583_v62, 0.0 }
 0x12e   : > { %v966_v27 = vmax.f32 %v1765_v6, %v912_v55  ;;  %v969_v47 = vmax.f32 %v897_v63, %v915_v23  ;;  %v949_v25 = vmax.f32 %v869_v59, 0.0  ;;  %v1004_v30 = vmax.f32 %v968_v26, %v986_v20 }
 0x12f   : > { %v984_v13 = vmax.f32 %v1766_v58, %v948_v43  ;;  %v987_v10 = vmax.f32 %v933_v48, %v951_v22  ;;  %v967_v57 = vmax.f32 %v895_v49, %v913_v42 }
 0x130   : > { %v985_v38 = vmax.f32 %v931_v7, %v949_v25  ;;  %1022 = vst [vmem:[%s1596_s29 + $0x80] sm:$0xff] %v1004_v30 }
 0x131   : > { %v1002_v31 = vmax.f32 %v966_v27, %v984_v13  ;;  %v1005_v56 = vmax.f32 %v969_v47, %v987_v10 }
 0x132   : > { %v1003_v44 = vmax.f32 %v967_v57, %v985_v38 }
 0x133   : > { %1020 = vst [vmem:[%s1596_s29 + $0x70] sm:$0xff] %v1002_v31  ;;  %1023 = vst [vmem:[%s1596_s29 + $0x88] sm:$0xff] %v1005_v56 }
 0x134   : > { %1021 = vst [vmem:[%s1596_s29 + $0x78] sm:$0xff] %v1003_v44 }
 0x135 PF: > { %s13_s12 = sadd.s32 1, %s1334_s12  }
 0x136   : > { %p10_p5 = scmp.ge.s32.totalorder %s13_s12, 4  }
 0x138   :  { %12 = sbr.rel (!%p10_p5) target bundleno = 1 (0x1), region = 62 }

// kernel: classifier_forward.4
= control target key start
LH: loop header
LB: loop body
LE: loop exit
PB: predicated region body
PF: predicated region fallthrough
CT: control target
= control target key end

     0   :  { %s575_s12 = smov 0   ;;  %s643_s0 = inlined_call_operand.vmem [shape: bf16[128,160], index: 0, kind: input, shape index: {}]   ;;  %s644_s1 = inlined_call_operand.vmem [shape: bf16[160,128], index: 1, kind: input, shape index: {}]   ;;  %s645_s2 = inlined_call_operand.vmem [shape: f32[1,128], index: 2, kind: input, shape index: {}]   ;;  %s646_s3 = inlined_call_operand.vmem [shape: f32[32,128], index: 3, kind: output, shape index: {}]  }
   0x1 LB: > { %s459_s13 = sadd.s32 4294967295, %s552_s12   ;;  %p463_p0 = scmp.ge.s32.totalorder %s552_s12, 1  ;;  %s552_s12 = sphi %s575_s12, %s13_s12  }
   0x2   : > { %p139_p1 = scmp.lt.s32.totalorder %s552_s12, 3 }
   0x4   : > { %p140_p2 = pnand %p463_p0, %p139_p1 }
   0x5   : > { %v524_v0 = vld [vmem:[%s644_s1] sm:$0xff] (!%p140_p2)   ;;  %v554_v1 = vmov (!%p140_p2), 0   ;;  %s464_s16 = sshll.u32 (!%p140_p2), %s459_s13, 3  ;;  %v525_v2 = vld [vmem:[%s644_s1 + $0x8] sm:$0xff] (!%p140_p2)   ;;  %v526_v3 = vld [vmem:[%s644_s1 + $0x10] sm:$0xff] (!%p140_p2)   ;;  %vm309_vm0 = vcmask (!%p140_p2), 261120  }
   0x6   : > { %143 = sbr.rel (%p140_p2) target bundleno = 277 (0x115), region = 32  ;;  %322 = vmatprep.subr.bf16.mxu0 (!%p140_p2), %v554_v1  ;;  %495 = vmatprep.subr.bf16.mxu1 (!%p140_p2), %v554_v1  ;;  %p165_p3 = scmp.lt.s32.totalorder (!%p140_p2), %s464_s16, 15  ;;  %v527_v4 = vld [vmem:[%s644_s1 + $0x18] sm:$0xff] (!%p140_p2)   ;;  %v528_v7 = vld [vmem:[%s644_s1 + $0x20] sm:$0xff] (!%p140_p2)   ;;  %v529_v8 = vld [vmem:[%s644_s1 + $0x28] sm:$0xff] (!%p140_p2)  }
   0x7   : > { %323 = vmatpush1.bf16.msra.mxu0 (!%p140_p2), %v524_v0  ;;  %505 = vmatpush1.bf16.msra.mxu1 (!%p140_p2), %v524_v0  ;;  %v530_v9 = vld [vmem:[%s644_s1 + $0x30] sm:$0xff] (!%p140_p2)   ;;  %v531_v10 = vld [vmem:[%s644_s1 + $0x38] sm:$0xff] (!%p140_p2)   ;;  %v532_v11 = vld [vmem:[%s644_s1 + $0x40] sm:$0xff] (!%p140_p2)   ;;  %s467_s14 = sshll.u32 (!%p140_p2), %s459_s13, 1 }
   0x8   : > { %324 = vmatprep.subr.bf16.mxu0 (!%p140_p2), %v554_v1  ;;  %496 = vmatprep.subr.bf16.mxu1 (!%p140_p2), %v554_v1  ;;  %v533_v12 = vld [vmem:[%s644_s1 + $0x48] sm:$0xff] (!%p140_p2)   ;;  %v469_v25 = vld [vmem:[%s645_s2] ss:$0 sm:$0xff] (!%p140_p2)  ;;  %p172_p4 = scmp.lt.s32.totalorder (!%p140_p2), %s467_s14, 3 }
   0xb   : > { %325 = vmatpush1.bf16.msra.mxu0 (!%p140_p2), %v525_v2  ;;  %506 = vmatpush1.bf16.msra.mxu1 (!%p140_p2), %v525_v2 }
   0xc   : > { %326 = vmatprep.subr.bf16.mxu0 (!%p140_p2), %v554_v1  ;;  %497 = vmatprep.subr.bf16.mxu1 (!%p140_p2), %v554_v1 }
   0xd   : > { %s648_s16 = smov (!%p165_p3, %s464_s16), 15  ;;  %s650_s14 = smov (!%p172_p4, %s467_s14), 3 }
   0xe   : > { %s494_s21 = sshll.u32 %s648_s16, 3  ;;  %s468_s13 = sshll.u32 %s650_s14, 3 }
   0xf   : > { %s597_s24 = scalar_lea.vmem %s643_s0, %s494_s21  ;;  %327 = vmatpush1.bf16.msra.mxu0 %v526_v3  ;;  %507 = vmatpush1.bf16.msra.mxu1 %v526_v3  ;;  %s175_s19 = scalar_lea.vmem %s646_s3, %s468_s13 }
  0x10   : > { %328 = vmatprep.subr.bf16.mxu0 %v554_v1  ;;  %498 = vmatprep.subr.bf16.mxu1 %v554_v1  ;;  %v536_v5 = vld [vmem:[%s597_s24 + $0x4] ss:$8 sps:$4 sm:$0xff]   ;;  %v534_v13 = vld [vmem:[%s597_s24] ss:$8 sps:$4 sm:$0xff]   ;;  %v540_v15 = vld [vmem:[%s597_s24 + $0x14] ss:$8 sps:$4 sm:$0xff]  }
  0x11   : > { %v539_v6 = vld [vmem:[%s597_s24 + $0x24] ss:$8 sps:$4 sm:$0xff]   ;;  %488 = vmatprep.mubr.msk.bf16.mxu0 %vm309_vm0, %v536_v5  ;;  %v537_v14 = vld [vmem:[%s597_s24 + $0x20] ss:$8 sps:$4 sm:$0xff]   ;;  %v542_v16 = vld [vmem:[%s597_s24 + $0x34] ss:$8 sps:$4 sm:$0xff]  }
  0x12   : > { %490 = vmatprep.mubr.msk.bf16.mxu1 %vm309_vm0, %v539_v6  ;;  %v544_v17 = vld [vmem:[%s597_s24 + $0x10] ss:$8 sps:$4 sm:$0xff]  }
  0x13   : > { %329 = vmatpush1.bf16.msra.mxu0 %v527_v4  ;;  %508 = vmatpush1.bf16.msra.mxu1 %v527_v4  ;;  %v545_v18 = vld [vmem:[%s597_s24 + $0x30] ss:$8 sps:$4 sm:$0xff]  }
  0x14   : > { %330 = vmatprep.subr.bf16.mxu0 %v554_v1  ;;  %499 = vmatprep.subr.bf16.mxu1 %v554_v1 }
  0x17   : > { %331 = vmatpush1.bf16.msra.mxu0 %v528_v7  ;;  %509 = vmatpush1.bf16.msra.mxu1 %v528_v7 }
  0x18   : > { %332 = vmatprep.subr.bf16.mxu0 %v554_v1  ;;  %500 = vmatprep.subr.bf16.mxu1 %v554_v1 }
  0x1b   : > { %333 = vmatpush1.bf16.msra.mxu0 %v529_v8  ;;  %510 = vmatpush1.bf16.msra.mxu1 %v529_v8 }
  0x1c   : > { %334 = vmatprep.subr.bf16.mxu0 %v554_v1  ;;  %501 = vmatprep.subr.bf16.mxu1 %v554_v1 }
  0x1f   : > { %335 = vmatpush1.bf16.msra.mxu0 %v530_v9  ;;  %511 = vmatpush1.bf16.msra.mxu1 %v530_v9 }
  0x20   : > { %336 = vmatprep.subr.bf16.mxu0 %v554_v1  ;;  %502 = vmatprep.subr.bf16.mxu1 %v554_v1 }
  0x23   : > { %337 = vmatpush1.bf16.msra.mxu0 %v531_v10  ;;  %512 = vmatpush1.bf16.msra.mxu1 %v531_v10 }
  0x24   : > { %338 = vmatprep.subr.bf16.mxu0 %v554_v1  ;;  %503 = vmatprep.subr.bf16.mxu1 %v554_v1 }
  0x27   : > { %339 = vmatpush1.bf16.msra.mxu0 %v532_v11  ;;  %513 = vmatpush1.bf16.msra.mxu1 %v532_v11 }
  0x28   : > { %340 = vmatprep.subr.bf16.mxu0 %v554_v1  ;;  %504 = vmatprep.subr.bf16.mxu1 %v554_v1 }
  0x2b   : > { %341 = vmatpush1.bf16.msra.mxu0 %v533_v12  ;;  %514 = vmatpush1.bf16.msra.mxu1 %v533_v12 }
  0x2e   : > { %355 = vmatmul.mubr.bf16.vlgmr.msra.gmra.mrb[0].mxu0 %v534_v13  ;;  %371 = vmatmul.mubr.bf16.vlgmr.msra.gmra.mrb[0].mxu1 %v537_v14 }
  0x2f   : > { %489 = vmatprep.mubr.msk.bf16.mxu0 %vm309_vm0, %v540_v15  ;;  %491 = vmatprep.mubr.msk.bf16.mxu1 %vm309_vm0, %v542_v16 }
  0x36   : > { %363 = vmatmul.mubr.bf16.gmra.mrb[4].mxu0 %v544_v17  ;;  %379 = vmatmul.mubr.bf16.gmra.mrb[4].mxu1 %v545_v18 }
 0x101   : > { %v356_v19 = vpop.f32.mrb[0].mxu0  ;;  %v372_v20 = vpop.f32.mrb[0].mxu1 }
 0x102   : > { %v358_v21 = vpop.f32.mrb[1].mxu0  ;;  %v374_v22 = vpop.f32.mrb[1].mxu1  ;;  %v357_v28 = vadd.f32 %v469_v25, %v356_v19  ;;  %v373_v29 = vadd.f32 %v469_v25, %v372_v20 }
 0x103   : > { %v359_v23 = vpop.f32.mrb[2].mxu0  ;;  %v375_v24 = vpop.f32.mrb[2].mxu1 }
 0x104   : > { %v361_v26 = vpop.f32.mrb[3].mxu0  ;;  %v377_v27 = vpop.f32.mrb[3].mxu1  ;;  %v360_v30 = vadd.f32 %v469_v25, %v359_v23  ;;  %v376_v31 = vadd.f32 %v469_v25, %v375_v24  ;;  %v387_v38 = vmax.f32 %v357_v28, 0.0  ;;  %v391_v39 = vmax.f32 %v373_v29, 0.0 }
 0x106   : > { %v388_v48 = vmax.f32 %v360_v30, 0.0  ;;  %v392_v49 = vmax.f32 %v376_v31, 0.0 }
 0x109   : > { %v364_v32 = vpop.f32.mrb[4].mxu0  ;;  %v380_v33 = vpop.f32.mrb[4].mxu1 }
 0x10a   : > { %v365_v34 = vadd.f32 %v469_v25, %v364_v32  ;;  %v381_v35 = vadd.f32 %v469_v25, %v380_v33  ;;  %v366_v36 = vpop.f32.mrb[5].mxu0  ;;  %v382_v37 = vpop.f32.mrb[5].mxu1 }
 0x10b   : > { %v367_v40 = vpop.f32.mrb[6].mxu0  ;;  %v383_v41 = vpop.f32.mrb[6].mxu1 }
 0x10c   : > { %v389_v42 = vmax.f32 %v365_v34, 0.0  ;;  %v393_v43 = vmax.f32 %v381_v35, 0.0  ;;  %v368_v44 = vadd.f32 %v469_v25, %v367_v40  ;;  %v384_v45 = vadd.f32 %v469_v25, %v383_v41  ;;  %v369_v46 = vpop.f32.mrb[7].mxu0  ;;  %v385_v47 = vpop.f32.mrb[7].mxu1 }
 0x10e   : > { %v395_v50 = vmax.f32 %v387_v38, %v389_v42  ;;  %v397_v51 = vmax.f32 %v391_v39, %v393_v43  ;;  %v390_v52 = vmax.f32 %v368_v44, 0.0  ;;  %v394_v53 = vmax.f32 %v384_v45, 0.0 }
 0x110   : > { %v399_v54 = vmax.f32 %v395_v50, %v397_v51  ;;  %v396_v55 = vmax.f32 %v388_v48, %v390_v52  ;;  %v398_v56 = vmax.f32 %v392_v49, %v394_v53 }
 0x112   : > { %401 = vst [vmem:[%s175_s19] sm:$0xff] %v399_v54  ;;  %v400_v57 = vmax.f32 %v396_v55, %v398_v56 }
 0x114   : > { %402 = vst [vmem:[%s175_s19 + $0x8] sm:$0xff] %v400_v57 }
 0x115 PF: > { %s13_s12 = sadd.s32 1, %s552_s12  }
 0x116   : > { %p10_p5 = scmp.ge.s32.totalorder %s13_s12, 4  }
 0x118   :  { %12 = sbr.rel (!%p10_p5) target bundleno = 1 (0x1), region = 62 }

// kernel: classifier_forward.5
= control target key start
LH: loop header
LB: loop body
LE: loop exit
PB: predicated region body
PF: predicated region fallthrough
CT: control target
= control target key end

     0   :  { %v605_v1 = vmov 0.0   ;;  %vm606_vm0 = vmmov 0   ;;  %s782_s1 = inlined_call_operand.vmem [shape: bf16[256,128], index: 1, kind: input, shape index: {}]   ;;  %s783_s0 = inlined_call_operand.vmem [shape: bf16[16,256], index: 0, kind: input, shape index: {}]   ;;  %s784_s3 = inlined_call_operand.vmem [shape: bf16[128,128], index: 3, kind: input, shape index: {}]   ;;  %s785_s5 = inlined_call_operand.vmem [shape: bf16[128,128], index: 5, kind: input, shape index: {}]   ;;  %s786_s2 = inlined_call_operand.vmem [shape: f32[1,128], index: 2, kind: input, shape index: {}]   ;;  %s787_s4 = inlined_call_operand.vmem [shape: f32[1,128], index: 4, kind: input, shape index: {}]   ;;  %s788_s6 = inlined_call_operand.vmem [shape: f32[1,128], index: 6, kind: input, shape index: {}]   ;;  %s789_s7 = inlined_call_operand.vmem [shape: f32[16,128], index: 7, kind: output, shape index: {}]  }
   0x1   :  { %v570_v0 = vld [vmem:[%s782_s1 + $0x40] sm:$0xff]   ;;  %528 = vmatprep.subr.bf16.mxu1 %v605_v1  ;;  %v572_v3 = vld [vmem:[%s782_s1 + $0x48] sm:$0xff]   ;;  %v574_v5 = vld [vmem:[%s782_s1 + $0x50] sm:$0xff]   ;;  %544 = vmatprep.mubr.msk.bf16.mxu1 %vm606_vm0, %v605_v1 }
   0x2   :  { %v571_v2 = vld [vmem:[%s782_s1] sm:$0xff]   ;;  %488 = vmatprep.subr.bf16.mxu0 %v570_v0  ;;  %v573_v4 = vld [vmem:[%s782_s1 + $0x8] sm:$0xff]   ;;  %v575_v6 = vld [vmem:[%s782_s1 + $0x10] sm:$0xff]  }
   0x3   :  { %489 = vmatpush3.bf16.msra.mxu0 %v571_v2  ;;  %v576_v7 = vld [vmem:[%s782_s1 + $0x58] sm:$0xff]   ;;  %v578_v9 = vld [vmem:[%s782_s1 + $0x60] sm:$0xff]   ;;  %v580_v11 = vld [vmem:[%s782_s1 + $0x68] sm:$0xff]  }
   0x4   :  { %490 = vmatprep.subr.bf16.mxu0 %v572_v3  ;;  %v577_v8 = vld [vmem:[%s782_s1 + $0x18] sm:$0xff]   ;;  %v579_v10 = vld [vmem:[%s782_s1 + $0x20] sm:$0xff]   ;;  %v581_v12 = vld [vmem:[%s782_s1 + $0x28] sm:$0xff]  }
   0x5   :  { %v588_v13 = vld [vmem:[%s783_s0 + $0x4] ss:$8 sps:$4 sm:$0xff]   ;;  %v582_v15 = vld [vmem:[%s782_s1 + $0x70] sm:$0xff]   ;;  %v584_v18 = vld [vmem:[%s782_s1 + $0x78] sm:$0xff]  }
   0x6   :  { %v589_v14 = vld [vmem:[%s784_s3] sm:$0xff]   ;;  %206 = vmatprep.mubr.bf16.mxu0 %v588_v13  ;;  %v590_v16 = vld [vmem:[%s784_s3 + $0x8] sm:$0xff]   ;;  %v583_v17 = vld [vmem:[%s782_s1 + $0x30] sm:$0xff]  }
   0x7   :  { %491 = vmatpush3.bf16.msra.mxu0 %v573_v4  ;;  %529 = vmatpush3.bf16.msra.mxu1 %v589_v14  ;;  %v591_v19 = vld [vmem:[%s784_s3 + $0x10] sm:$0xff]   ;;  %v585_v20 = vld [vmem:[%s782_s1 + $0x38] sm:$0xff]   ;;  %v586_v22 = vld [vmem:[%s783_s0] ss:$8 sps:$4 sm:$0xff]  }
   0x8   :  { %492 = vmatprep.subr.bf16.mxu0 %v574_v5  ;;  %530 = vmatprep.subr.bf16.mxu1 %v605_v1  ;;  %v592_v21 = vld [vmem:[%s784_s3 + $0x18] sm:$0xff]   ;;  %v593_v23 = vld [vmem:[%s784_s3 + $0x20] sm:$0xff]   ;;  %v594_v24 = vld [vmem:[%s784_s3 + $0x28] sm:$0xff]  }
   0x9   :  { %v595_v25 = vld [vmem:[%s784_s3 + $0x30] sm:$0xff]   ;;  %v596_v26 = vld [vmem:[%s784_s3 + $0x38] sm:$0xff]   ;;  %v597_v27 = vld [vmem:[%s785_s5] sm:$0xff]  }
   0xa   :  { %v598_v28 = vld [vmem:[%s785_s5 + $0x8] sm:$0xff]   ;;  %v599_v29 = vld [vmem:[%s785_s5 + $0x10] sm:$0xff]   ;;  %v600_v30 = vld [vmem:[%s785_s5 + $0x18] sm:$0xff]  }
   0xb   :  { %493 = vmatpush3.bf16.msra.mxu0 %v575_v6  ;;  %531 = vmatpush3.bf16.msra.mxu1 %v590_v16  ;;  %v601_v31 = vld [vmem:[%s785_s5 + $0x20] sm:$0xff]   ;;  %v602_v32 = vld [vmem:[%s785_s5 + $0x28] sm:$0xff]   ;;  %v603_v45 = vld [vmem:[%s785_s5 + $0x30] sm:$0xff]  }
   0xc   :  { %494 = vmatprep.subr.bf16.mxu0 %v576_v7  ;;  %532 = vmatprep.subr.bf16.mxu1 %v605_v1  ;;  %v451_v34 = vld [vmem:[%s786_s2] ss:$0 sm:$0xff]  ;;  %v604_v46 = vld [vmem:[%s785_s5 + $0x38] sm:$0xff]  }
   0xd   :  { %v470_v47 = vld [vmem:[%s787_s4] ss:$0 sm:$0xff] }
   0xe   :  { %v479_v57 = vld [vmem:[%s788_s6] ss:$0 sm:$0xff] }
   0xf   :  { %495 = vmatpush3.bf16.msra.mxu0 %v577_v8  ;;  %533 = vmatpush3.bf16.msra.mxu1 %v591_v19 }
  0x10   :  { %496 = vmatprep.subr.bf16.mxu0 %v578_v9  ;;  %534 = vmatprep.subr.bf16.mxu1 %v605_v1 }
  0x13   :  { %497 = vmatpush3.bf16.msra.mxu0 %v579_v10  ;;  %535 = vmatpush3.bf16.msra.mxu1 %v592_v21 }
  0x14   :  { %498 = vmatprep.subr.bf16.mxu0 %v580_v11  ;;  %536 = vmatprep.subr.bf16.mxu1 %v605_v1 }
  0x17   :  { %499 = vmatpush3.bf16.msra.mxu0 %v581_v12  ;;  %537 = vmatpush3.bf16.msra.mxu1 %v593_v23 }
  0x18   :  { %500 = vmatprep.subr.bf16.mxu0 %v582_v15  ;;  %538 = vmatprep.subr.bf16.mxu1 %v605_v1 }
  0x1b   :  { %501 = vmatpush3.bf16.msra.mxu0 %v583_v17  ;;  %539 = vmatpush3.bf16.msra.mxu1 %v594_v24 }
  0x1c   :  { %502 = vmatprep.subr.bf16.mxu0 %v584_v18  ;;  %540 = vmatprep.subr.bf16.mxu1 %v605_v1 }
  0x1f   :  { %503 = vmatpush3.bf16.msra.mxu0 %v585_v20  ;;  %541 = vmatpush3.bf16.msra.mxu1 %v595_v25 }
  0x20   :  { %548 = vmatprep.subr.bf16.mxu0 %v605_v1  ;;  %542 = vmatprep.subr.bf16.mxu1 %v605_v1 }
  0x22   :  { %207 = vmatmul.mubr.bf16.vlgmr.msra.gmra.mrb[0].mxu0 %v586_v22 }
  0x23   :  { %543 = vmatpush3.bf16.msra.mxu1 %v596_v26  ;;  %564 = vmatprep.mubr.msk.bf16.mxu0 %vm606_vm0, %v605_v1 }
  0x24   :  { %549 = vmatpush3.bf16.msra.mxu0 %v597_v27 }
  0x25   :  { %550 = vmatprep.subr.bf16.mxu0 %v605_v1 }
  0x28   :  { %551 = vmatpush3.bf16.msra.mxu0 %v598_v28 }
  0x29   :  { %552 = vmatprep.subr.bf16.mxu0 %v605_v1 }
  0x2c   :  { %553 = vmatpush3.bf16.msra.mxu0 %v599_v29 }
  0x2d   :  { %554 = vmatprep.subr.bf16.mxu0 %v605_v1 }
  0x30   :  { %555 = vmatpush3.bf16.msra.mxu0 %v600_v30 }
  0x31   :  { %556 = vmatprep.subr.bf16.mxu0 %v605_v1 }
  0x34   :  { %557 = vmatpush3.bf16.msra.mxu0 %v601_v31 }
  0x35   :  { %558 = vmatprep.subr.bf16.mxu0 %v605_v1 }
  0x38   :  { %559 = vmatpush3.bf16.msra.mxu0 %v602_v32 }
  0x39   :  { %560 = vmatprep.subr.bf16.mxu0 %v605_v1 }
  0x3c   :  { %561 = vmatpush3.bf16.msra.mxu0 %v603_v45 }
  0x3d   :  { %562 = vmatprep.subr.bf16.mxu0 %v605_v1 }
  0x40   :  { %563 = vmatpush3.bf16.msra.mxu0 %v604_v46 }
  0xf5   :  { %v504_v33 = vpop.f32.mrb[0].mxu0 }
  0xf6   :  { %v505_v35 = vpop.f32.mrb[1].mxu0 }
  0xf7   :  { %v506_v36 = vadd.f32 %v505_v35, %v504_v33  ;;  %v507_v37 = vpop.f32.mrb[2].mxu0 }
  0xf8   :  { %v508_v38 = vpop.f32.mrb[3].mxu0 }
  0xf9   :  { %v209_v39 = vadd.f32 %v506_v36, %v451_v34  ;;  %v509_v40 = vadd.f32 %v508_v38, %v507_v37 }
  0xfb   :  { %v212_v41 = vadd.f32 %v509_v40, %v451_v34  ;;  %v215_v42 = vmax.f32 %v209_v39, 0.0 }
  0xfd   :  { %v216_v43 = vmax.f32 %v212_v41, 0.0 }
  0xff   :  { %v217_v44 = vpack.c.bf16 %v216_v43, %v215_v42 }
 0x101   :  { %545 = vmatmul.mubr.bf16.vlgmr.msra.gmra.mrb[0].mxu1 %v217_v44 }
 0x1d4   :  { %v323_v48 = vpop.f32.mrb[0].mxu1 }
 0x1d5   :  { %v324_v49 = vadd.f32 %v470_v47, %v323_v48  ;;  %v546_v50 = vpop.f32.mrb[1].mxu1 }
 0x1d6   :  { %v326_v51 = vpop.f32.mrb[2].mxu1 }
 0x1d7   :  { %v327_v52 = vadd.f32 %v470_v47, %v326_v51  ;;  %v547_v53 = vpop.f32.mrb[3].mxu1  ;;  %v330_v54 = vmax.f32 %v324_v49, 0.0 }
 0x1d9   :  { %v331_v55 = vmax.f32 %v327_v52, 0.0 }
 0x1db   :  { %v332_v56 = vpack.c.bf16 %v331_v55, %v330_v54 }
 0x1dd   :  { %565 = vmatmul.mubr.bf16.vlgmr.msra.gmra.mrb[4].mxu0 %v332_v56 }
 0x2b0   :  { %v438_v58 = vpop.f32.mrb[4].mxu0 }
 0x2b1   :  { %v439_v59 = vadd.f32 %v479_v57, %v438_v58  ;;  %v566_v60 = vpop.f32.mrb[5].mxu0 }
 0x2b2   :  { %v441_v61 = vpop.f32.mrb[6].mxu0 }
 0x2b3   :  { %445 = vst [vmem:[%s789_s7] sm:$0xff] %v439_v59  ;;  %v442_v62 = vadd.f32 %v479_v57, %v441_v61  ;;  %v567_v63 = vpop.f32.mrb[7].mxu0 }
 0x2b5   :  { %446 = vst [vmem:[%s789_s7 + $0x8] sm:$0xff] %v442_v62 }

</bundles_post_ra>
